<compile_context>
chip_gen: v6e
topology: v6e:2x2x1
jax: 0.10.0
libtpu: 0.0.40
codegen_flags: <defaults>
</compile_context>

<pallas_src>
import jax
import jax.numpy as jnp
from jax.experimental import pallas as pl
from jax.experimental.pallas import tpu as pltpu


def _bm_kernel(x_ref, kw_ref, kwsw_ref, kh_ref, shkh_ref,
               mver_ref, mhor_ref, sel_ref, o_ref):
    f32 = jnp.float32
    X = x_ref[...]                                   # (H, B*C*W) float32
    H, L = X.shape
    dot = lambda a, b: jnp.dot(a, b, preferred_element_type=f32)

    # ---- 9-tap zero-padded averages on the MXU (banded 1/9 matrices) ----
    B_hor = dot(X, kw_ref[...])                      # AvgPool2d((1,9)) over ZeroPad((4,4,0,0))
    B_ver = dot(kh_ref[...], X)                      # AvgPool2d((9,1)) over ZeroPad((0,0,4,4))
    # Shifted blurs via pre-fused constants (no chained/serial MXU dependency).
    Bh_rt = dot(X, kwsw_ref[...])                    # == within-block B_hor[:, j+1]
    Bv_dn = dot(shkh_ref[...], X)                    # == B_ver[h+1, :]

    # ---- neighbor shifts of X on the XLU (circular; wrapped / cross-block
    #      entries fall only on positions the interior masks zero out) ----
    X_dn = pltpu.roll(X, shift=H - 1, axis=0)        # X_dn[h, :] = X[h+1, :]
    X_rt = pltpu.roll(X, shift=L - 1, axis=1)        # X_rt[:, j] = X[:, j+1]

    # ---- relu'd detail differences, interior-masked ----
    V_ver = jnp.maximum(jnp.abs(X - X_dn) - jnp.abs(B_ver - Bv_dn), 0.0) * mver_ref[...]
    V_hor = jnp.maximum(jnp.abs(X - X_rt) - jnp.abs(B_hor - Bh_rt), 0.0) * mhor_ref[...]

    # ---- per-(batch, channel) segmented lane reduction + sublane reduce ----
    S_ver = jnp.sum(dot(V_ver, sel_ref[...]), axis=0, keepdims=True)   # (1, OUT_LANES)
    S_hor = jnp.sum(dot(V_hor, sel_ref[...]), axis=0, keepdims=True)
    o_ref[...] = jnp.maximum(S_ver, S_hor)


def bm_forward(x):
    """x: (B, C, H, W) float32 -> (B, C) float32 blur metric (PyTorch BM.forward)."""
    B, C, H, W = x.shape
    assert H >= 4 and W >= 4, "BM interior masks assume H >= 4 and W >= 4"
    x = x.astype(jnp.float32)
    BC = B * C
    L = BC * W                                        # lane width after batch/channel fold
    OUT_LANES = max(128, ((BC + 127) // 128) * 128)   # lane-dense output slab
    f32 = jnp.float32
    # TODO(synk): if L ever exceeds a few hundred lanes, tile the channel axis via a
    # grid instead of a single (L, L) banded matrix.

    # ---- lane-dense repack: (B, C, H, W) -> (H, B*C*W) ----
    xt = jnp.transpose(x, (2, 0, 1, 3)).reshape(H, L)

    # ---- constants, hoisted out of the kernel (resident VMEM inputs) ----
    jr = jnp.arange(L)[:, None]
    jc = jnp.arange(L)[None, :]
    same_blk = (jr // W) == (jc // W)                 # same (batch, channel) block
    # Block-diagonal banded 1/9 matrix: zero-padded 9-tap horizontal average.
    KW = jnp.where(same_blk & (jnp.abs(jr - jc) <= 4), 1.0 / 9.0, 0.0).astype(f32)
    # Within-block right-neighbor shift: (X @ SW)[h, j] = X[h, j+1] (else 0).
    SW = jnp.where(same_blk & (jr == jc + 1), 1.0, 0.0).astype(f32)
    KW_SW = KW @ SW                                   # Bh_rt = X @ KW_SW

    hr = jnp.arange(H)[:, None]
    hc = jnp.arange(H)[None, :]
    KH = jnp.where(jnp.abs(hr - hc) <= 4, 1.0 / 9.0, 0.0).astype(f32)   # vertical blur
    SH = jnp.where(hc == hr + 1, 1.0, 0.0).astype(f32)                  # (SH @ X)[h] = X[h+1]
    SH_KH = SH @ KH                                   # Bv_dn = SH_KH @ X

    # Interior masks replacing the [:, :, 1:-1, 1:-1] slices; they also zero the
    # roll-wrapped rows / cross-block shifted lanes.
    hh = jnp.arange(H)[:, None]
    ww = jnp.arange(L)[None, :] % W
    mask_ver = (((hh >= 1) & (hh <= H - 3)) &
                ((ww >= 1) & (ww <= W - 2))).astype(f32)
    mask_hor = (((hh >= 1) & (hh <= H - 2)) &
                ((ww >= 1) & (ww <= W - 3))).astype(f32)

    # Lane-padded per-(batch, channel) selector for the segmented lane reduction.
    sr = jnp.arange(L)[:, None] // W
    sc = jnp.arange(OUT_LANES)[None, :]
    sel = (sr == sc).astype(f32)                      # (L, OUT_LANES)

    out = pl.pallas_call(
        _bm_kernel,
        out_shape=jax.ShapeDtypeStruct((1, OUT_LANES), jnp.float32),
    )(xt, KW, KW_SW, KH, SH_KH, mask_ver, mask_hor, sel)

    return out[0, :BC].reshape(B, C)


def bm_reference(x):
    """Pure-JAX reference of the PyTorch forward, for verification."""
    B, C, H, W = x.shape
    x_h = jnp.pad(x, ((0, 0), (0, 0), (0, 0), (4, 4)))
    x_v = jnp.pad(x, ((0, 0), (0, 0), (4, 4), (0, 0)))
    B_hor = sum(x_h[:, :, :, k:k + W] for k in range(9)) / 9.0
    B_ver = sum(x_v[:, :, k:k + H, :] for k in range(9)) / 9.0
    D_F_ver = jnp.abs(x[:, :, :-1, :] - x[:, :, 1:, :])
    D_F_hor = jnp.abs(x[:, :, :, :-1] - x[:, :, :, 1:])
    D_B_ver = jnp.abs(B_ver[:, :, :-1, :] - B_ver[:, :, 1:, :])
    D_B_hor = jnp.abs(B_hor[:, :, :, :-1] - B_hor[:, :, :, 1:])
    V_ver = jnp.maximum(D_F_ver - D_B_ver, 0.0)
    V_hor = jnp.maximum(D_F_hor - D_B_hor, 0.0)
    S_V_ver = jnp.sum(V_ver[:, :, 1:-1, 1:-1], axis=(-2, -1))
    S_V_hor = jnp.sum(V_hor[:, :, 1:-1, 1:-1], axis=(-2, -1))
    return jnp.maximum(S_V_ver, S_V_hor)


if __name__ == "__main__":
    key = jax.random.PRNGKey(0)
    B, C, H, W = 2, 4, 16, 16
    x = jax.random.normal(key, (B, C, H, W), dtype=jnp.float32)

    bm = jax.jit(bm_forward)
    blur = bm(x)
    blur = jax.block_until_ready(blur)

    ref = bm_reference(x)
    assert blur.shape == (B, C)
    assert jnp.allclose(blur, ref, atol=1e-3, rtol=2e-3), (blur, ref)

    print("KERNEL_OK")
</pallas_src>

<mosaic_0001>
module attributes {stable_mosaic.version = 11 : i64} {
  func.func @_bm_kernel(%arg0: memref<16x128xf32, #tpu.memory_space<vmem>>, %arg1: memref<128x128xf32, #tpu.memory_space<vmem>>, %arg2: memref<128x128xf32, #tpu.memory_space<vmem>>, %arg3: memref<16x16xf32, #tpu.memory_space<vmem>>, %arg4: memref<16x16xf32, #tpu.memory_space<vmem>>, %arg5: memref<16x128xf32, #tpu.memory_space<vmem>>, %arg6: memref<16x128xf32, #tpu.memory_space<vmem>>, %arg7: memref<128x128xf32, #tpu.memory_space<vmem>>, %arg8: memref<1x128xf32, #tpu.memory_space<vmem>>) attributes {dimension_semantics = [], scalar_prefetch = 0 : i64, scratch_operands = 0 : i64, tpu.core_type = #tpu.core_type<tc>} {
    %c0 = arith.constant 0 : index
    %c0_0 = arith.constant 0 : index
    %0 = vector.load %arg0[%c0, %c0_0] : memref<16x128xf32, #tpu.memory_space<vmem>>, vector<16x128xf32>
    %c0_1 = arith.constant 0 : index
    %c0_2 = arith.constant 0 : index
    %1 = vector.load %arg1[%c0_1, %c0_2] : memref<128x128xf32, #tpu.memory_space<vmem>>, vector<128x128xf32>
    %cst = arith.constant dense<0.000000e+00> : vector<16x128xf32>
    %2 = tpu.matmul %0, %1, %cst {dimension_numbers = #tpu.dot_dimension_numbers<[1], [0], [0], [1], [0, 0, 1, 1], [], []>} : vector<16x128xf32>, vector<128x128xf32>, vector<16x128xf32> -> vector<16x128xf32>
    %c0_3 = arith.constant 0 : index
    %c0_4 = arith.constant 0 : index
    %3 = vector.load %arg3[%c0_3, %c0_4] : memref<16x16xf32, #tpu.memory_space<vmem>>, vector<16x16xf32>
    %cst_5 = arith.constant dense<0.000000e+00> : vector<16x128xf32>
    %4 = tpu.matmul %3, %0, %cst_5 {dimension_numbers = #tpu.dot_dimension_numbers<[1], [0], [0], [1], [0, 0, 1, 1], [], []>} : vector<16x16xf32>, vector<16x128xf32>, vector<16x128xf32> -> vector<16x128xf32>
    %c0_6 = arith.constant 0 : index
    %c0_7 = arith.constant 0 : index
    %5 = vector.load %arg2[%c0_6, %c0_7] : memref<128x128xf32, #tpu.memory_space<vmem>>, vector<128x128xf32>
    %cst_8 = arith.constant dense<0.000000e+00> : vector<16x128xf32>
    %6 = tpu.matmul %0, %5, %cst_8 {dimension_numbers = #tpu.dot_dimension_numbers<[1], [0], [0], [1], [0, 0, 1, 1], [], []>} : vector<16x128xf32>, vector<128x128xf32>, vector<16x128xf32> -> vector<16x128xf32>
    %c0_9 = arith.constant 0 : index
    %c0_10 = arith.constant 0 : index
    %7 = vector.load %arg4[%c0_9, %c0_10] : memref<16x16xf32, #tpu.memory_space<vmem>>, vector<16x16xf32>
    %cst_11 = arith.constant dense<0.000000e+00> : vector<16x128xf32>
    %8 = tpu.matmul %7, %0, %cst_11 {dimension_numbers = #tpu.dot_dimension_numbers<[1], [0], [0], [1], [0, 0, 1, 1], [], []>} : vector<16x16xf32>, vector<16x128xf32>, vector<16x128xf32> -> vector<16x128xf32>
    %c15_i32 = arith.constant 15 : i32
    %9 = tpu.dynamic_rotate %0 by %c15_i32 dim 0 : vector<16x128xf32>, i32 -> vector<16x128xf32>
    %c127_i32 = arith.constant 127 : i32
    %10 = tpu.dynamic_rotate %0 by %c127_i32 dim 1 : vector<16x128xf32>, i32 -> vector<16x128xf32>
    %11 = arith.subf %0, %9 : vector<16x128xf32>
    %12 = math.absf %11 : vector<16x128xf32>
    %13 = arith.subf %4, %8 : vector<16x128xf32>
    %14 = math.absf %13 : vector<16x128xf32>
    %15 = arith.subf %12, %14 : vector<16x128xf32>
    %cst_12 = arith.constant 0.000000e+00 : f32
    %16 = vector.broadcast %cst_12 : f32 to vector<16x128xf32>
    %17 = arith.maximumf %15, %16 : vector<16x128xf32>
    %c0_13 = arith.constant 0 : index
    %c0_14 = arith.constant 0 : index
    %18 = vector.load %arg5[%c0_13, %c0_14] : memref<16x128xf32, #tpu.memory_space<vmem>>, vector<16x128xf32>
    %19 = arith.mulf %17, %18 : vector<16x128xf32>
    %20 = arith.subf %0, %10 : vector<16x128xf32>
    %21 = math.absf %20 : vector<16x128xf32>
    %22 = arith.subf %2, %6 : vector<16x128xf32>
    %23 = math.absf %22 : vector<16x128xf32>
    %24 = arith.subf %21, %23 : vector<16x128xf32>
    %cst_15 = arith.constant 0.000000e+00 : f32
    %25 = vector.broadcast %cst_15 : f32 to vector<16x128xf32>
    %26 = arith.maximumf %24, %25 : vector<16x128xf32>
    %c0_16 = arith.constant 0 : index
    %c0_17 = arith.constant 0 : index
    %27 = vector.load %arg6[%c0_16, %c0_17] : memref<16x128xf32, #tpu.memory_space<vmem>>, vector<16x128xf32>
    %28 = arith.mulf %26, %27 : vector<16x128xf32>
    %c0_18 = arith.constant 0 : index
    %c0_19 = arith.constant 0 : index
    %29 = vector.load %arg7[%c0_18, %c0_19] : memref<128x128xf32, #tpu.memory_space<vmem>>, vector<128x128xf32>
    %cst_20 = arith.constant dense<0.000000e+00> : vector<16x128xf32>
    %30 = tpu.matmul %19, %29, %cst_20 {dimension_numbers = #tpu.dot_dimension_numbers<[1], [0], [0], [1], [0, 0, 1, 1], [], []>} : vector<16x128xf32>, vector<128x128xf32>, vector<16x128xf32> -> vector<16x128xf32>
    %cst_21 = arith.constant dense<0.000000e+00> : vector<128xf32>
    %31 = vector.multi_reduction <add>, %30, %cst_21 [0] : vector<16x128xf32> to vector<128xf32>
    %32 = vector.shape_cast %31 : vector<128xf32> to vector<1x128xf32>
    %c0_22 = arith.constant 0 : index
    %c0_23 = arith.constant 0 : index
    %33 = vector.load %arg7[%c0_22, %c0_23] : memref<128x128xf32, #tpu.memory_space<vmem>>, vector<128x128xf32>
    %cst_24 = arith.constant dense<0.000000e+00> : vector<16x128xf32>
    %34 = tpu.matmul %28, %33, %cst_24 {dimension_numbers = #tpu.dot_dimension_numbers<[1], [0], [0], [1], [0, 0, 1, 1], [], []>} : vector<16x128xf32>, vector<128x128xf32>, vector<16x128xf32> -> vector<16x128xf32>
    %cst_25 = arith.constant dense<0.000000e+00> : vector<128xf32>
    %35 = vector.multi_reduction <add>, %34, %cst_25 [0] : vector<16x128xf32> to vector<128xf32>
    %36 = vector.shape_cast %35 : vector<128xf32> to vector<1x128xf32>
    %37 = arith.maximumf %32, %36 : vector<1x128xf32>
    %c0_26 = arith.constant 0 : index
    %c0_27 = arith.constant 0 : index
    %38 = vector.load %arg8[%c0_26, %c0_27] : memref<1x128xf32, #tpu.memory_space<vmem>>, vector<1x128xf32>
    tpu.vector_store %arg8[%c0_26, %c0_27], %37 {strides = array<i32>} : memref<1x128xf32, #tpu.memory_space<vmem>>, vector<1x128xf32>,
    return
  }
}

</mosaic_0001>

<bundles_post_ra>
// kernel: squeeze.1
= control target key start
LH: loop header
LB: loop body
LE: loop exit
PB: predicated region body
PF: predicated region fallthrough
CT: control target
= control target key end

     0   :  { %s77_s0 = inlined_call_operand.vmem [shape: f32[8], index: 0, kind: input, shape index: {}]   ;;  %s78_s1 = inlined_call_operand.hbm [shape: f32[2,4], index: 1, kind: output, shape index: {}]  }
   0x1   :  { %v6_v0 = vld [vmem:[%s77_s0] sm:$0x1] }
   0x2   :  { %2 = vsyncpa [#allocation1], 0  ;;  %7 = vst [vmem:[#allocation3] sm:$0x1] %v6_v0  ;;  %vm9_vm0 = vcmask 31744   ;;  %s59_s0 = smov 124  }
   0x3   :  { %s60_s8 = smov [#allocation0]  }
   0x4   :  { %s29_s9 = sshll.u32 %s60_s8, 4  ;;  %s30_s9 = int_to_ptr.vmem [resolvable:$true] %s29_s9 }
   0x5   :  { %s37_s10 = scalar_lea.vmem %s30_s9, 32  ;;  %p42_p1 = scmp.lt.s32.totalorder %s30_s9, %s30_s9 }
   0x6   :  { %p38_p0 = scmp.ne.s32.totalorder %s30_s9, %s37_s10  ;;  %p43_p2 = scmp.lt.s32.totalorder %s37_s10, %s37_s10 }
   0x8   :  { %p44_p3 = por %p43_p2, %p42_p1 }
   0x9   :  { %v11_v1 = vld [vmem:[#allocation3] sm:$0x1]  }
   0xa   :  { %v8_v2 = vld [vmem:[#allocation3] sm:$0x1]   ;;  %12 = vrot.lane.b32.xlu0 %v11_v1, %s59_s0  ;;  %p45_p4 = pnand %p44_p3, %p38_p0 }
   0xb   :  { %10 = vst.msk [vmem:[#allocation2] sm:$0x1] %vm9_vm0, %v8_v2  }
  0x7c   :  { %v13_v3 = vpop.permute.xlu0 %12  }
  0x7d   :  { %16 = vst.msk [vmem:[#allocation2 + $0x1] sm:$0x1] %vm9_vm0, %v13_v3  }
  0x84   :  { %v21_v4 = vld [vmem:[#allocation2] sm:$0x3] }
  0x85   :  { %24 = vst [vmem:[#allocation0] sm:$0x3] %v21_v4 }
  0x86   :  { %48 = shalt.err (!%p45_p4)
}
  0x87   :  { %32 = dma.vmem_to_hbm [thread:$0]  %s30_s9, 32, %s78_s1, [#allocation1]  }
  0x88   :  { %57 = dma.done.wait [#allocation1], 32  }
  0x89   :  { %58 = vsyncadd [#allocation1], 4294967264 }
  0x8a   :  { %34 = vsyncpa [#allocation1], 1 }

// kernel: bm_forward.1
= control target key start
LH: loop header
LB: loop body
LE: loop exit
PB: predicated region body
PF: predicated region fallthrough
CT: control target
= control target key end

     0   :  { %vm124_vm0 = vcmask 130048   ;;  %v382_v54 = vlaneseq  ;;  %s1099_s1 = inlined_call_operand.vmem [shape: f32[128,128], index: 1, kind: input, shape index: {}]   ;;  %s1100_s0 = inlined_call_operand.vmem [shape: f32[16,128], index: 0, kind: input, shape index: {}]   ;;  %s1101_s3 = inlined_call_operand.vmem [shape: f32[16,16], index: 3, kind: input, shape index: {}]   ;;  %s1102_s2 = inlined_call_operand.vmem [shape: f32[128,128], index: 2, kind: input, shape index: {}]   ;;  %s1103_s4 = inlined_call_operand.vmem [shape: f32[16,16], index: 4, kind: input, shape index: {}]   ;;  %s1104_s7 = inlined_call_operand.vmem [shape: f32[128,128], index: 7, kind: input, shape index: {}]   ;;  %s1105_s6 = inlined_call_operand.vmem [shape: f32[16,128], index: 6, kind: input, shape index: {}]   ;;  %s1106_s5 = inlined_call_operand.vmem [shape: f32[16,128], index: 5, kind: input, shape index: {}]   ;;  %s1107_s8 = inlined_call_operand.vmem [shape: f32[1,128], index: 8, kind: output, shape index: {}]  }
   0x1   :  { %v46_v0 = vld [vmem:[%s1099_s1 + $0x78] sm:$0xff]  ;;  %v900_v1 = vld [vmem:[%s1100_s0 + $0x8] sm:$0xff]  ;;  %v45_v2 = vld [vmem:[%s1099_s1 + $0x70] sm:$0xff] }
   0x2   :  { %693 = vmatprep.subr.mxu0 %v46_v0  ;;  %728 = vmatprep.subr.mxu1 %v900_v1  ;;  %v909_v3 = vld [vmem:[%s1100_s0] sm:$0xff]  ;;  %v44_v5 = vld [vmem:[%s1099_s1 + $0x68] sm:$0xff]  ;;  %v221_v7 = vld [vmem:[%s1102_s2 + $0x78] sm:$0xff]  ;;  %v383_v56 = vshrl.u32 %v382_v54, 7  ;;  %v381_v58 = vrot.slane %v900_v1, 1 }
   0x3   :  { %694 = vmatpush3.msra.mxu0 %v46_v0  ;;  %729 = vmatpush3.msra.mxu1 %v900_v1  ;;  %v122_v4 = vld [vmem:[%s1101_s3] sm:$0xff]  ;;  %v123_v6 = vld [vmem:[%s1101_s3 + $0x8] sm:$0xff]  ;;  %v220_v9 = vld [vmem:[%s1102_s2 + $0x70] sm:$0xff]  ;;  %v380_v57 = vrot.slane %v909_v3, 1 }
   0x4   :  { %695 = vmatprep.subr.mxu0 %v45_v2  ;;  %730 = vmatprep.subr.mxu1 %v909_v3  ;;  %v43_v8 = vld [vmem:[%s1099_s1 + $0x60] sm:$0xff]  ;;  %v42_v10 = vld [vmem:[%s1099_s1 + $0x58] sm:$0xff]  ;;  %v219_v11 = vld [vmem:[%s1102_s2 + $0x68] sm:$0xff]  ;;  %vm384_vm1 = vcmp.lt.s32.totalorder %v383_v56, 7 }
   0x5   :  { %696 = vmatpush3.msra.mxu0 %v45_v2  ;;  %731 = vmatpush3.msra.mxu1 %v909_v3  ;;  %v41_v12 = vld [vmem:[%s1099_s1 + $0x50] sm:$0xff]  ;;  %v218_v13 = vld [vmem:[%s1102_s2 + $0x60] sm:$0xff]  ;;  %v40_v14 = vld [vmem:[%s1099_s1 + $0x48] sm:$0xff]  ;;  %v386_v62 = vsel %vm384_vm1, %v381_v58, %v380_v57  ;;  %v385_v63 = vsel %vm384_vm1, %v380_v57, %v381_v58 }
   0x6   :  { %732 = vmatprep.mubr.msk.f32.mxu1 %vm124_vm0, %v122_v4  ;;  %697 = vmatprep.subr.mxu0 %v44_v5  ;;  %v217_v15 = vld [vmem:[%s1102_s2 + $0x58] sm:$0xff]  ;;  %v39_v16 = vld [vmem:[%s1099_s1 + $0x40] sm:$0xff]  ;;  %v216_v17 = vld [vmem:[%s1102_s2 + $0x50] sm:$0xff]  ;;  %v392_v4 = vsub.f32 %v900_v1, %v386_v62 }
   0x7   :  { %733 = vmatmul.mubr.msk.f32.vlgmr.msra.gmra.mxu1 %vm124_vm0, %v123_v6  ;;  %735 = vmatprep.subr.mxu1 %v221_v7  ;;  %v38_v18 = vld [vmem:[%s1099_s1 + $0x38] sm:$0xff]  ;;  %v215_v19 = vld [vmem:[%s1102_s2 + $0x48] sm:$0xff]  ;;  %v37_v20 = vld [vmem:[%s1099_s1 + $0x30] sm:$0xff]  ;;  %v391_v6 = vsub.f32 %v909_v3, %v385_v63 }
   0x8   :  { %698 = vmatpush3.msra.mxu0 %v44_v5  ;;  %736 = vmatpush3.msra.mxu1 %v221_v7  ;;  %v214_v21 = vld [vmem:[%s1102_s2 + $0x40] sm:$0xff]  ;;  %v36_v22 = vld [vmem:[%s1099_s1 + $0x28] sm:$0xff]  ;;  %v213_v23 = vld [vmem:[%s1102_s2 + $0x38] sm:$0xff] }
   0x9   :  { %699 = vmatprep.subr.mxu0 %v43_v8  ;;  %737 = vmatprep.subr.mxu1 %v220_v9  ;;  %v35_v24 = vld [vmem:[%s1099_s1 + $0x20] sm:$0xff]  ;;  %v212_v25 = vld [vmem:[%s1102_s2 + $0x30] sm:$0xff]  ;;  %v34_v26 = vld [vmem:[%s1099_s1 + $0x18] sm:$0xff] }
   0xa   :  { %700 = vmatpush3.msra.mxu0 %v43_v8  ;;  %738 = vmatpush3.msra.mxu1 %v220_v9  ;;  %v211_v27 = vld [vmem:[%s1102_s2 + $0x28] sm:$0xff]  ;;  %v33_v28 = vld [vmem:[%s1099_s1 + $0x10] sm:$0xff]  ;;  %v210_v29 = vld [vmem:[%s1102_s2 + $0x20] sm:$0xff] }
   0xb   :  { %701 = vmatprep.subr.mxu0 %v42_v10  ;;  %739 = vmatprep.subr.mxu1 %v219_v11  ;;  %v32_v30 = vld [vmem:[%s1099_s1 + $0x8] sm:$0xff]  ;;  %v209_v31 = vld [vmem:[%s1102_s2 + $0x18] sm:$0xff]  ;;  %v31_v32 = vld [vmem:[%s1099_s1] sm:$0xff] }
   0xc   :  { %702 = vmatpush3.msra.mxu0 %v42_v10  ;;  %740 = vmatpush3.msra.mxu1 %v219_v11  ;;  %v208_v33 = vld [vmem:[%s1102_s2 + $0x10] sm:$0xff]  ;;  %v207_v34 = vld [vmem:[%s1102_s2 + $0x8] sm:$0xff]  ;;  %v206_v35 = vld [vmem:[%s1102_s2] sm:$0xff]  ;;  %s848_s2 = smov 127  }
   0xd   :  { %703 = vmatprep.subr.mxu0 %v41_v12  ;;  %741 = vmatprep.subr.mxu1 %v218_v13  ;;  %v297_v36 = vld [vmem:[%s1103_s4] sm:$0xff]  ;;  %v298_v37 = vld [vmem:[%s1103_s4 + $0x8] sm:$0xff]  ;;  %v438_v38 = vld [vmem:[%s1104_s7 + $0x78] sm:$0xff] }
   0xe   :  { %704 = vmatpush3.msra.mxu0 %v41_v12  ;;  %742 = vmatpush3.msra.mxu1 %v218_v13  ;;  %v437_v39 = vld [vmem:[%s1104_s7 + $0x70] sm:$0xff]  ;;  %v436_v40 = vld [vmem:[%s1104_s7 + $0x68] sm:$0xff]  ;;  %v435_v41 = vld [vmem:[%s1104_s7 + $0x60] sm:$0xff]  ;;  %v394_v12 = vand.u32 2147483647, %v392_v4 }
   0xf   :  { %705 = vmatprep.subr.mxu0 %v40_v14  ;;  %743 = vmatprep.subr.mxu1 %v217_v15  ;;  %v434_v42 = vld [vmem:[%s1104_s7 + $0x58] sm:$0xff]  ;;  %v433_v43 = vld [vmem:[%s1104_s7 + $0x50] sm:$0xff]  ;;  %v432_v44 = vld [vmem:[%s1104_s7 + $0x48] sm:$0xff] }
  0x10   :  { %706 = vmatpush3.msra.mxu0 %v40_v14  ;;  %744 = vmatpush3.msra.mxu1 %v217_v15  ;;  %v431_v45 = vld [vmem:[%s1104_s7 + $0x40] sm:$0xff]  ;;  %v430_v46 = vld [vmem:[%s1104_s7 + $0x38] sm:$0xff]  ;;  %v429_v47 = vld [vmem:[%s1104_s7 + $0x30] sm:$0xff] }
  0x11   :  { %707 = vmatprep.subr.mxu0 %v39_v16  ;;  %745 = vmatprep.subr.mxu1 %v216_v17  ;;  %v428_v48 = vld [vmem:[%s1104_s7 + $0x28] sm:$0xff]  ;;  %v427_v49 = vld [vmem:[%s1104_s7 + $0x20] sm:$0xff]  ;;  %v426_v50 = vld [vmem:[%s1104_s7 + $0x18] sm:$0xff] }
  0x12   :  { %708 = vmatpush3.msra.mxu0 %v39_v16  ;;  %746 = vmatpush3.msra.mxu1 %v216_v17  ;;  %v425_v51 = vld [vmem:[%s1104_s7 + $0x10] sm:$0xff]  ;;  %v424_v52 = vld [vmem:[%s1104_s7 + $0x8] sm:$0xff]  ;;  %v423_v53 = vld [vmem:[%s1104_s7] sm:$0xff]  ;;  %v393_v16 = vand.u32 2147483647, %v391_v6 }
  0x13   :  { %709 = vmatprep.subr.mxu0 %v38_v18  ;;  %747 = vmatprep.subr.mxu1 %v215_v19 }
  0x14   :  { %710 = vmatpush3.msra.mxu0 %v38_v18  ;;  %748 = vmatpush3.msra.mxu1 %v215_v19 }
  0x15   :  { %711 = vmatprep.subr.mxu0 %v37_v20  ;;  %749 = vmatprep.subr.mxu1 %v214_v21 }
  0x16   :  { %712 = vmatpush3.msra.mxu0 %v37_v20  ;;  %750 = vmatpush3.msra.mxu1 %v214_v21 }
  0x17   :  { %713 = vmatprep.subr.mxu0 %v36_v22  ;;  %751 = vmatprep.subr.mxu1 %v213_v23 }
  0x18   :  { %714 = vmatpush3.msra.mxu0 %v36_v22  ;;  %752 = vmatpush3.msra.mxu1 %v213_v23 }
  0x19   :  { %715 = vmatprep.subr.mxu0 %v35_v24  ;;  %753 = vmatprep.subr.mxu1 %v212_v25 }
  0x1a   :  { %716 = vmatpush3.msra.mxu0 %v35_v24  ;;  %754 = vmatpush3.msra.mxu1 %v212_v25 }
  0x1b   :  { %717 = vmatprep.subr.mxu0 %v34_v26  ;;  %755 = vmatprep.subr.mxu1 %v211_v27 }
  0x1c   :  { %718 = vmatpush3.msra.mxu0 %v34_v26  ;;  %756 = vmatpush3.msra.mxu1 %v211_v27 }
  0x1d   :  { %719 = vmatprep.subr.mxu0 %v33_v28  ;;  %757 = vmatprep.subr.mxu1 %v210_v29 }
  0x1e   :  { %720 = vmatpush3.msra.mxu0 %v33_v28  ;;  %758 = vmatpush3.msra.mxu1 %v210_v29  ;;  %v403_v28 = vld [vmem:[%s1106_s5] sm:$0xff] }
  0x1f   :  { %721 = vmatprep.subr.mxu0 %v32_v30  ;;  %759 = vmatprep.subr.mxu1 %v209_v31  ;;  %v419_v29 = vld [vmem:[%s1105_s6] sm:$0xff] }
  0x20   :  { %722 = vmatpush3.msra.mxu0 %v32_v30  ;;  %760 = vmatpush3.msra.mxu1 %v209_v31  ;;  %v420_v30 = vld [vmem:[%s1105_s6 + $0x8] sm:$0xff] }
  0x21   :  { %723 = vmatprep.subr.mxu0 %v31_v32  ;;  %761 = vmatprep.subr.mxu1 %v208_v33  ;;  %v404_v31 = vld [vmem:[%s1106_s5 + $0x8] sm:$0xff] }
  0x22   :  { %724 = vmatpush3.msra.mxu0 %v31_v32  ;;  %725 = vmatprep.mubr.f32.mxu0 %v909_v3 }
  0x23   :  { %762 = vmatpush3.msra.mxu1 %v208_v33  ;;  %726 = vmatmul.mubr.f32.vlgmr.msra.gmra.mxu0 %v900_v1 }
  0x24   :  { %763 = vmatprep.subr.mxu1 %v207_v34  ;;  %770 = vmatprep.subr.mxu0 %v900_v1 }
  0x25   :  { %764 = vmatpush3.msra.mxu1 %v207_v34  ;;  %771 = vmatpush3.msra.mxu0 %v900_v1 }
  0x26   :  { %765 = vmatprep.subr.mxu1 %v206_v35  ;;  %772 = vmatprep.subr.mxu0 %v909_v3 }
  0x27   :  { %766 = vmatpush3.msra.mxu1 %v206_v35  ;;  %767 = vmatprep.mubr.f32.mxu1 %v909_v3 }
  0x28   :  { %773 = vmatpush3.msra.mxu0 %v909_v3  ;;  %774 = vmatprep.mubr.msk.f32.mxu0 %vm124_vm0, %v297_v36 }
  0x29   :  { %768 = vmatmul.mubr.f32.vlgmr.msra.gmra.mxu1 %v900_v1  ;;  %775 = vmatmul.mubr.msk.f32.vlgmr.msra.gmra.mxu0 %vm124_vm0, %v298_v37 }
  0x2a   :  { %387 = vrot.lane.b32.xlu0 %v909_v3, %s848_s2  ;;  %777 = vmatprep.subr.mxu0 %v438_v38 }
  0x2b   :  { %812 = vmatprep.subr.mxu1 %v438_v38  ;;  %778 = vmatpush3.msra.mxu0 %v438_v38 }
  0x2c   :  { %813 = vmatpush3.msra.mxu1 %v438_v38  ;;  %779 = vmatprep.subr.mxu0 %v437_v39 }
  0x2d   :  { %814 = vmatprep.subr.mxu1 %v437_v39  ;;  %780 = vmatpush3.msra.mxu0 %v437_v39 }
  0x2e   :  { %389 = vrot.lane.b32.xlu0 %v900_v1, %s848_s2  ;;  %815 = vmatpush3.msra.mxu1 %v437_v39 }
  0x2f   :  { %781 = vmatprep.subr.mxu0 %v436_v40  ;;  %816 = vmatprep.subr.mxu1 %v436_v40 }
  0x30   :  { %782 = vmatpush3.msra.mxu0 %v436_v40  ;;  %817 = vmatpush3.msra.mxu1 %v436_v40 }
  0x31   :  { %783 = vmatprep.subr.mxu0 %v435_v41  ;;  %818 = vmatprep.subr.mxu1 %v435_v41 }
  0x32   :  { %784 = vmatpush3.msra.mxu0 %v435_v41  ;;  %819 = vmatpush3.msra.mxu1 %v435_v41 }
  0x33   :  { %785 = vmatprep.subr.mxu0 %v434_v42  ;;  %820 = vmatprep.subr.mxu1 %v434_v42 }
  0x34   :  { %786 = vmatpush3.msra.mxu0 %v434_v42  ;;  %821 = vmatpush3.msra.mxu1 %v434_v42 }
  0x35   :  { %787 = vmatprep.subr.mxu0 %v433_v43  ;;  %822 = vmatprep.subr.mxu1 %v433_v43 }
  0x36   :  { %788 = vmatpush3.msra.mxu0 %v433_v43  ;;  %823 = vmatpush3.msra.mxu1 %v433_v43 }
  0x37   :  { %789 = vmatprep.subr.mxu0 %v432_v44  ;;  %824 = vmatprep.subr.mxu1 %v432_v44 }
  0x38   :  { %790 = vmatpush3.msra.mxu0 %v432_v44  ;;  %825 = vmatpush3.msra.mxu1 %v432_v44 }
  0x39   :  { %791 = vmatprep.subr.mxu0 %v431_v45  ;;  %826 = vmatprep.subr.mxu1 %v431_v45 }
  0x3a   :  { %792 = vmatpush3.msra.mxu0 %v431_v45  ;;  %827 = vmatpush3.msra.mxu1 %v431_v45 }
  0x3b   :  { %793 = vmatprep.subr.mxu0 %v430_v46  ;;  %828 = vmatprep.subr.mxu1 %v430_v46 }
  0x3c   :  { %794 = vmatpush3.msra.mxu0 %v430_v46  ;;  %829 = vmatpush3.msra.mxu1 %v430_v46 }
  0x3d   :  { %795 = vmatprep.subr.mxu0 %v429_v47  ;;  %830 = vmatprep.subr.mxu1 %v429_v47 }
  0x3e   :  { %796 = vmatpush3.msra.mxu0 %v429_v47  ;;  %831 = vmatpush3.msra.mxu1 %v429_v47 }
  0x3f   :  { %797 = vmatprep.subr.mxu0 %v428_v48  ;;  %832 = vmatprep.subr.mxu1 %v428_v48 }
  0x40   :  { %798 = vmatpush3.msra.mxu0 %v428_v48  ;;  %833 = vmatpush3.msra.mxu1 %v428_v48 }
  0x41   :  { %799 = vmatprep.subr.mxu0 %v427_v49  ;;  %834 = vmatprep.subr.mxu1 %v427_v49 }
  0x42   :  { %800 = vmatpush3.msra.mxu0 %v427_v49  ;;  %835 = vmatpush3.msra.mxu1 %v427_v49 }
  0x43   :  { %801 = vmatprep.subr.mxu0 %v426_v50  ;;  %836 = vmatprep.subr.mxu1 %v426_v50 }
  0x44   :  { %802 = vmatpush3.msra.mxu0 %v426_v50  ;;  %837 = vmatpush3.msra.mxu1 %v426_v50 }
  0x45   :  { %803 = vmatprep.subr.mxu0 %v425_v51  ;;  %838 = vmatprep.subr.mxu1 %v425_v51 }
  0x46   :  { %804 = vmatpush3.msra.mxu0 %v425_v51  ;;  %839 = vmatpush3.msra.mxu1 %v425_v51 }
  0x47   :  { %805 = vmatprep.subr.mxu0 %v424_v52  ;;  %840 = vmatprep.subr.mxu1 %v424_v52 }
  0x48   :  { %806 = vmatpush3.msra.mxu0 %v424_v52  ;;  %841 = vmatpush3.msra.mxu1 %v424_v52 }
  0x49   :  { %807 = vmatprep.subr.mxu0 %v423_v53  ;;  %842 = vmatprep.subr.mxu1 %v423_v53 }
  0x4a   :  { %808 = vmatpush3.msra.mxu0 %v423_v53  ;;  %843 = vmatpush3.msra.mxu1 %v423_v53 }
  0x9c   :  { %v388_v55 = vpop.permute.xlu0 %387 }
  0x9d   :  { %v407_v7 = vsub.f32 %v909_v3, %v388_v55 }
  0x9f   :  { %v409_v21 = vand.u32 2147483647, %v407_v7 }
  0xa0   :  { %v390_v59 = vpop.permute.xlu0 %389 }
  0xa1   :  { %v408_v2 = vsub.f32 %v900_v1, %v390_v59 }
  0xa3   :  { %v410_v10 = vand.u32 2147483647, %v408_v2 }
  0xc7   :  { %v734_v60 = vpop.f32.mrf.mxu1 }
  0xc9   :  { %v197_v5 = vpop.f32.mrf.mxu1 }
  0xe3   :  { %v727_v61 = vpop.f32.mrf.mxu0 }
  0xe5   :  { %v113_v0 = vpop.f32.mrf.mxu0 }
  0xe9   :  { %v769_v8 = vpop.f32.mrf.mxu1  ;;  %v776_v9 = vpop.f32.mrf.mxu0 }
  0xea   :  { %v412_v11 = vsub.f32 %v727_v61, %v769_v8  ;;  %v396_v13 = vsub.f32 %v734_v60, %v776_v9 }
  0xeb   :  { %v288_v14 = vpop.f32.mrf.mxu1  ;;  %v371_v15 = vpop.f32.mrf.mxu0 }
  0xec   :  { %v414_v17 = vand.u32 2147483647, %v412_v11  ;;  %v398_v18 = vand.u32 2147483647, %v396_v13  ;;  %v411_v19 = vsub.f32 %v113_v0, %v288_v14  ;;  %v395_v20 = vsub.f32 %v197_v5, %v371_v15 }
  0xee   :  { %v416_v1 = vsub.f32 %v410_v10, %v414_v17  ;;  %v400_v22 = vsub.f32 %v394_v12, %v398_v18  ;;  %v413_v23 = vand.u32 2147483647, %v411_v19  ;;  %v397_v24 = vand.u32 2147483647, %v395_v20 }
  0xf0   :  { %v415_v25 = vsub.f32 %v409_v21, %v413_v23  ;;  %v399_v3 = vsub.f32 %v393_v16, %v397_v24  ;;  %v418_v26 = vmax.f32 %v416_v1, 0.0  ;;  %v402_v27 = vmax.f32 %v400_v22, 0.0 }
  0xf2   :  { %v417_v32 = vmax.f32 %v415_v25, 0.0  ;;  %v401_v33 = vmax.f32 %v399_v3, 0.0  ;;  %v422_v36 = vmul.f32 %v420_v30, %v418_v26  ;;  %v406_v37 = vmul.f32 %v404_v31, %v402_v27 }
  0xf4   :  { %v405_v34 = vmul.f32 %v403_v28, %v401_v33  ;;  %v421_v35 = vmul.f32 %v419_v29, %v417_v32 }
  0xf6   :  { %809 = vmatprep.mubr.f32.mxu0 %v405_v34  ;;  %844 = vmatprep.mubr.f32.mxu1 %v421_v35 }
  0xf7   :  { %810 = vmatmul.mubr.f32.vlgmr.msra.gmra.mxu0 %v406_v37  ;;  %845 = vmatmul.mubr.f32.vlgmr.msra.gmra.mxu1 %v422_v36 }
 0x1b7   :  { %v811_v38 = vpop.f32.mrf.mxu0  ;;  %v846_v39 = vpop.f32.mrf.mxu1 }
 0x1b9   :  { %v505_v40 = vpop.f32.mrf.mxu0  ;;  %v587_v41 = vpop.f32.mrf.mxu1 }
 0x1ba   :  { %v514_v42 = vadd.f32 %v811_v38, %v505_v40  ;;  %v596_v43 = vadd.f32 %v846_v39, %v587_v41 }
 0x1bc   :  { %v515_v44 = vrot.slane %v514_v42, 4  ;;  %v597_v45 = vrot.slane %v596_v43, 4 }
 0x1be   :  { %v516_v46 = vadd.f32 %v515_v44, %v514_v42  ;;  %v598_v47 = vadd.f32 %v597_v45, %v596_v43 }
 0x1c0   :  { %v517_v48 = vrot.slane %v516_v46, 2  ;;  %v599_v49 = vrot.slane %v598_v47, 2 }
 0x1c2   :  { %v518_v50 = vadd.f32 %v517_v48, %v516_v46  ;;  %v600_v51 = vadd.f32 %v599_v49, %v598_v47 }
 0x1c4   :  { %v519_v52 = vrot.slane %v518_v50, 1  ;;  %v601_v53 = vrot.slane %v600_v51, 1 }
 0x1c6   :  { %v520_v54 = vadd.f32 %v519_v52, %v518_v50  ;;  %v602_v55 = vadd.f32 %v601_v53, %v600_v51 }
 0x1c8   :  { %v603_v56 = vmax.f32 %v520_v54, %v602_v55 }
 0x1ca   :  { %604 = vst [vmem:[%s1107_s8] sm:$0x1] %v603_v56 }

</bundles_post_ra>
